<compile_context>
chip_gen: v7x
topology: tpu7x:2x2x1
jax: 0.10.0
libtpu: 0.0.40
codegen_flags: <defaults>
</compile_context>

<pallas_src>
import functools

import jax
import jax.numpy as jnp
from jax.experimental import pallas as pl
from jax.experimental.pallas import tpu as pltpu


def _cdiv(a, b):
    return (a + b - 1) // b


def _round_up(x, m):
    return _cdiv(x, m) * m


def _gcn_kernel(a_ref, x_ref, w_ref, b_ref, o_ref, acc_ref, *,
                x_is_resident, tk, compute_dtype):
    """One (row-tile i, contraction-tile k) grid step.

    acc (f32 VMEM scratch) accumulates A_blk @ X_blk over k; at the last k
    step the linear layer + bias + ReLU runs and the lane-dense
    (tm, f_out_p) tile is written with a single unmasked store.
    """
    k = pl.program_id(1)

    @pl.when(k == 0)
    def _():
        acc_ref[...] = jnp.zeros_like(acc_ref)

    # A arrives in its HBM dtype (typically f32); cast on the VPU — hidden
    # under the A-stream DMA / MXU and avoids a wrapper-side cast pre-pass.
    a = a_ref[...].astype(compute_dtype)
    if x_is_resident:
        start = pl.multiple_of(k * tk, 128)
        x = x_ref[pl.ds(start, tk), :]
    else:
        x = x_ref[...]
    acc_ref[...] += jnp.dot(a, x, preferred_element_type=jnp.float32)

    @pl.when(k == pl.num_programs(1) - 1)
    def _():
        h = jnp.dot(acc_ref[...].astype(w_ref.dtype), w_ref[...],
                    preferred_element_type=jnp.float32)
        h = h + b_ref[...]                        # bias kept in f32
        o_ref[...] = jnp.maximum(h, 0.0).astype(o_ref.dtype)


def graph_convolution_layer(adjacency, node_features, cumulative_weights,
                            weight, bias, *,
                            compute_dtype=jnp.bfloat16,
                            out_dtype=None,
                            tm_max=512, tk_max=2048,
                            x_resident_bytes=4 << 20):
    """weight: (F_out, F_in) torch-style; bias: (F_out,).

    Returns (N, F_out + W_cols) float32, matching torch.cat(..., dim=1).
    """
    n, f_in = node_features.shape
    f_out, f_in_w = weight.shape
    assert f_in_w == f_in, (weight.shape, node_features.shape)
    out_dtype = compute_dtype if out_dtype is None else out_dtype

    # --- tile / padding math (even-split: pad only to 16 / 128 alignment) ---
    row_align, lane_align = 16, 128
    aligned_rows = _round_up(n, row_align)
    aligned_k = _round_up(n, lane_align)

    n_row_blocks = _cdiv(aligned_rows, tm_max)
    if n_row_blocks == 1 and aligned_rows >= 256:
        n_row_blocks = 2                  # give both v7x TensorCores a tile
    tm = _round_up(_cdiv(aligned_rows, n_row_blocks), row_align)
    n_rows = tm * n_row_blocks

    n_k_blocks = _cdiv(aligned_k, tk_max)
    tk = _round_up(_cdiv(aligned_k, n_k_blocks), lane_align)
    n_k = tk * n_k_blocks

    f_in_p = _round_up(f_in, 128)         # MXU-sized 2nd-matmul contraction
    f_out_p = _round_up(f_out, 128)       # lane-dense output width

    # --- operand shaping (plain JAX glue, fused by XLA) ---------------------
    # A keeps its HBM dtype; a padded copy is made only when alignment needs it.
    if (n_rows, n_k) == adjacency.shape:
        a_in = adjacency
    else:
        a_in = jnp.zeros((n_rows, n_k), adjacency.dtype).at[:n, :n].set(adjacency)
    # TODO(synk): for very large unaligned graphs, replace this pad copy with
    # memory_space=pl.ANY + in-kernel tail masking; int8/fp8 A would further
    # halve the dominant HBM stream where the graph tolerates quantization.

    x_p = jnp.zeros((n_k, f_in_p), compute_dtype).at[:n, :f_in].set(
        node_features.astype(compute_dtype))
    w_p = jnp.zeros((f_in_p, f_out_p), compute_dtype).at[:f_in, :f_out].set(
        weight.T.astype(compute_dtype))
    b_p = jnp.zeros((1, f_out_p), jnp.float32).at[0, :f_out].set(
        bias.astype(jnp.float32))

    # --- X residency: keep the whole (n_k, f_in_p) X in VMEM when cheap -----
    x_bytes = n_k * f_in_p * jnp.dtype(compute_dtype).itemsize
    x_is_resident = x_bytes <= x_resident_bytes
    if x_is_resident:
        x_spec = pl.BlockSpec((n_k, f_in_p), lambda i, k: (0, 0))
    else:
        x_spec = pl.BlockSpec((tk, f_in_p), lambda i, k: (k, 0))

    # --- explicit VMEM budget (covers v5e 16 MiB scoped default, v7x 64 MiB) -
    a_item = jnp.dtype(a_in.dtype).itemsize
    c_item = jnp.dtype(compute_dtype).itemsize
    o_item = jnp.dtype(out_dtype).itemsize
    vmem_bytes = (2 * tm * tk * a_item                                  # A
                  + 2 * (n_k if x_is_resident else tk) * f_in_p * c_item  # X
                  + 2 * f_in_p * f_out_p * c_item                      # W
                  + 2 * f_out_p * 4                                    # bias
                  + 2 * tm * f_out_p * o_item                          # out
                  + tm * f_in_p * 4)                                   # acc
    vmem_limit = int(min(max(vmem_bytes + (4 << 20), 32 << 20), 128 << 20))

    kernel = functools.partial(_gcn_kernel, x_is_resident=x_is_resident,
                               tk=tk, compute_dtype=compute_dtype)

    h_pad = pl.pallas_call(
        kernel,
        out_shape=jax.ShapeDtypeStruct((n_rows, f_out_p), out_dtype),
        grid_spec=pltpu.PrefetchScalarGridSpec(
            num_scalar_prefetch=0,
            grid=(n_row_blocks, n_k_blocks),
            in_specs=[
                pl.BlockSpec((tm, tk), lambda i, k: (i, k)),            # A
                x_spec,                                                 # X
                pl.BlockSpec((f_in_p, f_out_p), lambda i, k: (0, 0)),   # W^T
                pl.BlockSpec((1, f_out_p), lambda i, k: (0, 0)),        # bias
            ],
            out_specs=pl.BlockSpec((tm, f_out_p), lambda i, k: (i, 0)),
            scratch_shapes=[pltpu.VMEM((tm, f_in_p), jnp.float32)],
        ),
        compiler_params=pltpu.CompilerParams(
            dimension_semantics=("parallel", "arbitrary"),
            vmem_limit_bytes=vmem_limit),
    )(a_in, x_p, w_p, b_p)

    # Un-pad and concat the passthrough features outside the kernel.
    h = h_pad[:n, :f_out].astype(jnp.float32)
    return jnp.concatenate([h, cumulative_weights.astype(jnp.float32)], axis=1)


def _reference(adjacency, node_features, cumulative_weights, weight, bias,
               compute_dtype=jnp.float32, out_dtype=None):
    """Pure-JAX reference mirroring the kernel's cast points."""
    out_dtype = compute_dtype if out_dtype is None else out_dtype
    a = adjacency.astype(compute_dtype)
    x = node_features.astype(compute_dtype)
    w = weight.T.astype(compute_dtype)
    ax = jnp.dot(a, x, preferred_element_type=jnp.float32)
    h = jnp.dot(ax.astype(compute_dtype), w, preferred_element_type=jnp.float32)
    h = jnp.maximum(h + bias.astype(jnp.float32), 0.0)
    h = h.astype(out_dtype).astype(jnp.float32)
    return jnp.concatenate([h, cumulative_weights.astype(jnp.float32)], axis=1)


if __name__ == "__main__":
    def make_inputs(n, f_in, f_out, w_cols, key):
        k_a, k_x, k_c, k_w, k_b = jax.random.split(key, 5)
        adjacency = jax.random.uniform(k_a, (n, n), dtype=jnp.float32)
        node_features = jax.random.normal(k_x, (n, f_in), dtype=jnp.float32)
        cumulative_weights = jax.random.normal(k_c, (n, w_cols), dtype=jnp.float32)
        bound = 1.0 / (f_in ** 0.5)   # deterministic nn.Linear-style init
        weight = jax.random.uniform(k_w, (f_out, f_in), dtype=jnp.float32,
                                    minval=-bound, maxval=bound)
        bias = jax.random.uniform(k_b, (f_out,), dtype=jnp.float32,
                                  minval=-bound, maxval=bound)
        return adjacency, node_features, cumulative_weights, weight, bias

    # --- small graph, f32 compute path (tight tolerance) --------------------
    N, F_IN, F_OUT, W_COLS = 16, 32, 64, 16
    a, x, c, w, b = make_inputs(N, F_IN, F_OUT, W_COLS, jax.random.PRNGKey(0))

    out = jax.block_until_ready(
        graph_convolution_layer(a, x, c, w, b, compute_dtype=jnp.float32))
    ref = _reference(a, x, c, w, b, compute_dtype=jnp.float32)
    assert out.shape == (N, F_OUT + W_COLS), out.shape
    assert jnp.allclose(out, ref, atol=2e-3, rtol=2e-3), "f32 path mismatch"

    # --- small graph, bf16 MXU path (default perf config) -------------------
    out = jax.block_until_ready(graph_convolution_layer(a, x, c, w, b))
    ref = _reference(a, x, c, w, b, compute_dtype=jnp.bfloat16,
                     out_dtype=jnp.bfloat16)
    assert out.shape == (N, F_OUT + W_COLS), out.shape
    assert jnp.allclose(out, ref, atol=2e-2, rtol=2e-2), "bf16 path mismatch"

    # --- multi-tile grid (exercises k-accumulation + resident-X slicing) ----
    N2, F_IN2, F_OUT2, W_COLS2 = 160, 24, 48, 8
    a2, x2, c2, w2, b2 = make_inputs(N2, F_IN2, F_OUT2, W_COLS2,
                                     jax.random.PRNGKey(1))
    ref2 = _reference(a2, x2, c2, w2, b2, compute_dtype=jnp.bfloat16,
                      out_dtype=jnp.bfloat16)
    out2 = jax.block_until_ready(
        graph_convolution_layer(a2, x2, c2, w2, b2, tm_max=64, tk_max=128))
    assert out2.shape == (N2, F_OUT2 + W_COLS2), out2.shape
    assert jnp.allclose(out2, ref2, atol=2e-2, rtol=2e-2), "multi-tile mismatch"

    # --- streamed-X fallback path (x_resident_bytes=0) -----------------------
    out3 = jax.block_until_ready(
        graph_convolution_layer(a2, x2, c2, w2, b2, tm_max=64, tk_max=128,
                                x_resident_bytes=0))
    assert jnp.allclose(out3, ref2, atol=2e-2, rtol=2e-2), "streamed-X mismatch"

    print("KERNEL_OK")
</pallas_src>

<mosaic_0001>
module attributes {stable_mosaic.version = 11 : i64} {
  func.func @_gcn_kernel(%arg0: i32, %arg1: i32, %arg2: memref<16x128xf32, #tpu.memory_space<vmem>>, %arg3: memref<128x128xf32, #tpu.memory_space<vmem>>, %arg4: memref<128x128xf32, #tpu.memory_space<vmem>>, %arg5: memref<1x128xf32, #tpu.memory_space<vmem>>, %arg6: memref<16x128xf32, #tpu.memory_space<vmem>>, %arg7: memref<16x128xf32, #tpu.memory_space<vmem>>) attributes {dimension_semantics = [#tpu.dimension_semantics<parallel>, #tpu.dimension_semantics<arbitrary>], iteration_bounds = array<i64: 1, 1>, scalar_prefetch = 0 : i64, scratch_operands = 1 : i64, tpu.core_type = #tpu.core_type<tc>, window_params = [{transform_indices = @transform_0, window_bounds = array<i64: 16, 128>}, {pipeline_mode = #tpu.pipeline_mode<synchronous>, transform_indices = @transform_1, window_bounds = array<i64: 128, 128>}, {pipeline_mode = #tpu.pipeline_mode<synchronous>, transform_indices = @transform_2, window_bounds = array<i64: 128, 128>}, {pipeline_mode = #tpu.pipeline_mode<synchronous>, transform_indices = @transform_3, window_bounds = array<i64: 1, 128>}, {transform_indices = @transform_4, window_bounds = array<i64: 16, 128>}]} {
    %c0_i32 = arith.constant 0 : i32
    %0 = arith.cmpi eq, %arg1, %c0_i32 : i32
    %1 = arith.extui %0 : i1 to i32
    %c0_i32_0 = arith.constant 0 : i32
    %2 = arith.cmpi ne, %1, %c0_i32_0 : i32
    scf.if %2 {
      %cst_9 = arith.constant 0.000000e+00 : f32
      %15 = vector.broadcast %cst_9 : f32 to vector<16x128xf32>
      %c0_10 = arith.constant 0 : index
      %c0_11 = arith.constant 0 : index
      %16 = vector.load %arg7[%c0_10, %c0_11] : memref<16x128xf32, #tpu.memory_space<vmem>>, vector<16x128xf32>
      tpu.vector_store %arg7[%c0_10, %c0_11], %15 {strides = array<i32>} : memref<16x128xf32, #tpu.memory_space<vmem>>, vector<16x128xf32>,
    } else {
    }
    %c0 = arith.constant 0 : index
    %c0_1 = arith.constant 0 : index
    %3 = vector.load %arg2[%c0, %c0_1] : memref<16x128xf32, #tpu.memory_space<vmem>>, vector<16x128xf32>
    %c128_i32 = arith.constant 128 : i32
    %4 = arith.muli %arg1, %c128_i32 : i32
    %5 = tpu.assume_multiple %4, 128 : i32
    %6 = arith.index_cast %5 : i32 to index
    %c0_2 = arith.constant 0 : index
    %7 = vector.load %arg3[%6, %c0_2] : memref<128x128xf32, #tpu.memory_space<vmem>>, vector<128x128xf32>
    %c0_3 = arith.constant 0 : index
    %c0_4 = arith.constant 0 : index
    %8 = vector.load %arg7[%c0_3, %c0_4] : memref<16x128xf32, #tpu.memory_space<vmem>>, vector<16x128xf32>
    %cst = arith.constant dense<0.000000e+00> : vector<16x128xf32>
    %9 = tpu.matmul %3, %7, %cst {dimension_numbers = #tpu.dot_dimension_numbers<[1], [0], [0], [1], [0, 0, 1, 1], [], []>} : vector<16x128xf32>, vector<128x128xf32>, vector<16x128xf32> -> vector<16x128xf32>
    %10 = arith.addf %8, %9 : vector<16x128xf32>
    %c0_5 = arith.constant 0 : index
    %c0_6 = arith.constant 0 : index
    %11 = vector.load %arg7[%c0_5, %c0_6] : memref<16x128xf32, #tpu.memory_space<vmem>>, vector<16x128xf32>
    tpu.vector_store %arg7[%c0_5, %c0_6], %10 {strides = array<i32>} : memref<16x128xf32, #tpu.memory_space<vmem>>, vector<16x128xf32>,
    %c0_i32_7 = arith.constant 0 : i32
    %12 = arith.cmpi eq, %arg1, %c0_i32_7 : i32
    %13 = arith.extui %12 : i1 to i32
    %c0_i32_8 = arith.constant 0 : i32
    %14 = arith.cmpi ne, %13, %c0_i32_8 : i32
    scf.if %14 {
      %c0_9 = arith.constant 0 : index
      %c0_10 = arith.constant 0 : index
      %15 = vector.load %arg7[%c0_9, %c0_10] : memref<16x128xf32, #tpu.memory_space<vmem>>, vector<16x128xf32>
      %c0_11 = arith.constant 0 : index
      %c0_12 = arith.constant 0 : index
      %16 = vector.load %arg4[%c0_11, %c0_12] : memref<128x128xf32, #tpu.memory_space<vmem>>, vector<128x128xf32>
      %cst_13 = arith.constant dense<0.000000e+00> : vector<16x128xf32>
      %17 = tpu.matmul %15, %16, %cst_13 {dimension_numbers = #tpu.dot_dimension_numbers<[1], [0], [0], [1], [0, 0, 1, 1], [], []>} : vector<16x128xf32>, vector<128x128xf32>, vector<16x128xf32> -> vector<16x128xf32>
      %c0_14 = arith.constant 0 : index
      %c0_15 = arith.constant 0 : index
      %18 = vector.load %arg5[%c0_14, %c0_15] : memref<1x128xf32, #tpu.memory_space<vmem>>, vector<1x128xf32>
      %19 = vector.broadcast %18 : vector<1x128xf32> to vector<16x128xf32>
      %20 = arith.addf %17, %19 : vector<16x128xf32>
      %cst_16 = arith.constant 0.000000e+00 : f32
      %21 = vector.broadcast %cst_16 : f32 to vector<16x128xf32>
      %22 = arith.maximumf %20, %21 : vector<16x128xf32>
      %c0_17 = arith.constant 0 : index
      %c0_18 = arith.constant 0 : index
      %23 = vector.load %arg6[%c0_17, %c0_18] : memref<16x128xf32, #tpu.memory_space<vmem>>, vector<16x128xf32>
      tpu.vector_store %arg6[%c0_17, %c0_18], %22 {strides = array<i32>} : memref<16x128xf32, #tpu.memory_space<vmem>>, vector<16x128xf32>,
    } else {
    }
    return
  }
  func.func @transform_0(%arg0: i32, %arg1: i32) -> (i32, i32) {
    %c0_i32 = arith.constant 0 : i32
    return %arg0, %arg1 : i32, i32
  }
  func.func @transform_1(%arg0: i32, %arg1: i32) -> (i32, i32) {
    %c0_i32 = arith.constant 0 : i32
    %c0_i32_0 = arith.constant 0 : i32
    %c0_i32_1 = arith.constant 0 : i32
    return %c0_i32, %c0_i32_0 : i32, i32
  }
  func.func @transform_2(%arg0: i32, %arg1: i32) -> (i32, i32) {
    %c0_i32 = arith.constant 0 : i32
    %c0_i32_0 = arith.constant 0 : i32
    %c0_i32_1 = arith.constant 0 : i32
    return %c0_i32, %c0_i32_0 : i32, i32
  }
  func.func @transform_3(%arg0: i32, %arg1: i32) -> (i32, i32) {
    %c0_i32 = arith.constant 0 : i32
    %c0_i32_0 = arith.constant 0 : i32
    %c0_i32_1 = arith.constant 0 : i32
    return %c0_i32, %c0_i32_0 : i32, i32
  }
  func.func @transform_4(%arg0: i32, %arg1: i32) -> (i32, i32) {
    %c0_i32 = arith.constant 0 : i32
    %c0_i32_0 = arith.constant 0 : i32
    return %arg0, %c0_i32 : i32, i32
  }
}

</mosaic_0001>

<bundles_post_ra>
// kernel: tpu_custom_call.1
= control target key start
LH: loop header
LB: loop body
LE: loop exit
PB: predicated region body
PF: predicated region fallthrough
CT: control target
= control target key end

     0   :  { %9 = vsyncpa [#allocation4], 0  ;;  %s663_s0 = inlined_call_operand.hbm [shape: f32[16,128], index: 0, kind: input, shape index: {}]   ;;  %s664_s1 = inlined_call_operand.hbm [shape: f32[128,128], index: 1, kind: input, shape index: {}]   ;;  %s665_s2 = inlined_call_operand.hbm [shape: f32[128,128], index: 2, kind: input, shape index: {}]   ;;  %s666_s3 = inlined_call_operand.vmem [shape: f32[1,128], index: 3, kind: input, shape index: {}]   ;;  %s667_s4 = inlined_call_operand.hbm [shape: f32[16,128], index: 4, kind: output, shape index: {}]  }
   0x1   :  { %10 = vsyncpa [#allocation7], 0 }
   0x2   :  { %11 = vsyncpa [#allocation5], 0  ;;  %s562_s15 = smov [#allocation6]   ;;  %s563_s17 = smov [#allocation3]  }
   0x3   :  { %s29_s16 = sshll.u32 %s562_s15, 4  ;;  %s17_s18 = sshll.u32 %s563_s17, 4  ;;  %s30_s16 = int_to_ptr.vmem [resolvable:$true] %s29_s16  ;;  %s593_s18 = int_to_ptr.vmem [resolvable:$true] %s17_s18 }
   0x4   :  { %s468_s21 = scalar_lea.hbm %s664_s1, 2048 }
   0x5   :  { %p469_p0 = scmp.ne.s32.totalorder %s664_s1, %s468_s21  ;;  %p472_p1 = scmp.lt.u32.totalorder %s468_s21, %s664_s1 }
   0x7   :  { %p474_p2 = pnand %p472_p1, %p469_p0 }
   0x9   :  { %477 = shalt.err (!%p474_p2)
}
   0xa   :  { %s478_s26 = scalar_lea.vmem %s30_s16, 2048  ;;  %p483_p4 = scmp.lt.s32.totalorder %s30_s16, %s30_s16 }
   0xb   :  { %p479_p3 = scmp.ne.s32.totalorder %s30_s16, %s478_s26  ;;  %p484_p5 = scmp.lt.s32.totalorder %s478_s26, %s478_s26 }
   0xd   :  { %p485_p6 = por %p484_p5, %p483_p4 }
   0xf   :  { %p486_p7 = pnand %p485_p6, %p479_p3 }
  0x11   :  { %489 = shalt.err (!%p486_p7)
}
  0x12   :  { %s564_s27 = smov 128   ;;  %s565_s28 = smov 8  }
  0x13   :  { %35 = dma.hbm_to_vmem [thread:$0]  %s664_s1, 2048, %s30_s16, [#allocation7], %s564_s27, %s564_s27, %s565_s28  }
  0x14   :  { %s490_s7 = scalar_lea.hbm %s663_s0, 256 }
  0x15   :  { %p491_p8 = scmp.ne.s32.totalorder %s663_s0, %s490_s7  ;;  %p494_p9 = scmp.lt.u32.totalorder %s490_s7, %s663_s0 }
  0x17   :  { %p496_p10 = pnand %p494_p9, %p491_p8 }
  0x19   :  { %499 = shalt.err (!%p496_p10)
}
  0x1a   :  { %s500_s12 = scalar_lea.vmem %s593_s18, 256  ;;  %p505_p12 = scmp.lt.s32.totalorder %s593_s18, %s593_s18 }
  0x1b   :  { %p501_p11 = scmp.ne.s32.totalorder %s593_s18, %s500_s12  ;;  %p506_p13 = scmp.lt.s32.totalorder %s500_s12, %s500_s12 }
  0x1d   :  { %p507_p0 = por %p506_p13, %p505_p12 }
  0x1f   :  { %p508_p1 = pnand %p507_p0, %p501_p11 }
  0x21   :  { %511 = shalt.err (!%p508_p1)
}
  0x22   :  { %23 = dma.hbm_to_vmem [thread:$0]  %s663_s0, 256, %s593_s18, [#allocation4], %s564_s27, %s564_s27, %s565_s28  }
  0x23   :  { %s566_s14 = smov [#allocation8]   ;;  %s512_s19 = scalar_lea.hbm %s665_s2, 2048 }
  0x24   :  { %s41_s15 = sshll.u32 %s566_s14, 4  ;;  %p513_p2 = scmp.ne.s32.totalorder %s665_s2, %s512_s19  ;;  %s42_s15 = int_to_ptr.vmem [resolvable:$true] %s41_s15 }
  0x25   :  { %p516_p3 = scmp.lt.u32.totalorder %s512_s19, %s665_s2 }
  0x27   :  { %p518_p4 = pnand %p516_p3, %p513_p2 }
  0x29   :  { %521 = shalt.err (!%p518_p4)
}
  0x2a   :  { %s522_s24 = scalar_lea.vmem %s42_s15, 2048  ;;  %p527_p6 = scmp.lt.s32.totalorder %s42_s15, %s42_s15 }
  0x2b   :  { %p523_p5 = scmp.ne.s32.totalorder %s42_s15, %s522_s24  ;;  %p528_p7 = scmp.lt.s32.totalorder %s522_s24, %s522_s24 }
  0x2d   :  { %p529_p8 = por %p528_p7, %p527_p6 }
  0x2f   :  { %p530_p9 = pnand %p529_p8, %p523_p5 }
  0x31   :  { %533 = shalt.err (!%p530_p9)
}
  0x32   :  { %47 = dma.hbm_to_vmem [thread:$0]  %s665_s2, 2048, %s42_s15, [#allocation7], %s564_s27, %s564_s27, %s565_s28  }
  0x33   :  { %556 = dma.done.wait [#allocation4], 256  }
  0x34   :  { %557 = vsyncadd [#allocation4], 4294967040 }
  0x35   :  { %558 = dma.done.wait [#allocation7], 4096  }
  0x36   :  { %559 = vsyncadd [#allocation7], 4294963200  ;;  %v69_v0 = vld [vmem:[#allocation6] sm:$0xff]  ;;  %v70_v1 = vld [vmem:[#allocation6 + $0x8] sm:$0xff]  ;;  %s567_s26 = smov [#allocation9]  }
  0x37   :  { %v71_v2 = vld [vmem:[#allocation6 + $0x10] sm:$0xff]  ;;  %v398_v3 = vpack.c.bf16 %v70_v1, %v69_v0  ;;  %v72_v4 = vld [vmem:[#allocation6 + $0x18] sm:$0xff]  ;;  %v73_v6 = vld [vmem:[#allocation6 + $0x20] sm:$0xff]  ;;  %s278_s29 = sshll.u32 %s567_s26, 4  ;;  %s279_s29 = int_to_ptr.vmem [resolvable:$true] %s278_s29 }
  0x38   :  { %v402_v5 = vpack.c.bf16 %v72_v4, %v71_v2  ;;  %v74_v7 = vld [vmem:[#allocation6 + $0x28] sm:$0xff]  ;;  %v75_v9 = vld [vmem:[#allocation6 + $0x30] sm:$0xff]  ;;  %v76_v10 = vld [vmem:[#allocation6 + $0x38] sm:$0xff]  ;;  %s534_s30 = scalar_lea.vmem %s279_s29, 256  ;;  %p539_p11 = scmp.lt.s32.totalorder %s279_s29, %s279_s29 }
  0x39   :  { %399 = vmatprep.subr.bf16.mxu0 %v398_v3  ;;  %v406_v8 = vpack.c.bf16 %v74_v7, %v73_v6  ;;  %v65_v11 = vld [vmem:[#allocation3] sm:$0xff]  ;;  %v171_v12 = vld [vmem:[#allocation8] sm:$0xff]  ;;  %v172_v13 = vld [vmem:[#allocation8 + $0x8] sm:$0xff]  ;;  %v410_v20 = vpack.c.bf16 %v76_v10, %v75_v9  ;;  %p535_p10 = scmp.ne.s32.totalorder %s279_s29, %s534_s30  ;;  %p540_p12 = scmp.lt.s32.totalorder %s534_s30, %s534_s30 }
  0x3a   :  { %401 = vmatpush3.bf16.msra.mxu0 %v398_v3  ;;  %360 = vmatprep.mubr.f32.mxu0 %v65_v11  ;;  %v173_v14 = vld [vmem:[#allocation8 + $0x10] sm:$0xff]  ;;  %v430_v15 = vpack.c.bf16 %v172_v13, %v171_v12  ;;  %v174_v16 = vld [vmem:[#allocation8 + $0x18] sm:$0xff]  ;;  %v175_v18 = vld [vmem:[#allocation8 + $0x20] sm:$0xff] }
  0x3b   :  { %403 = vmatprep.subr.bf16.mxu0 %v402_v5  ;;  %v434_v17 = vpack.c.bf16 %v174_v16, %v173_v14  ;;  %v176_v19 = vld [vmem:[#allocation8 + $0x28] sm:$0xff]  ;;  %v77_v21 = vld [vmem:[#allocation6 + $0x40] sm:$0xff]  ;;  %v177_v24 = vld [vmem:[#allocation8 + $0x30] sm:$0xff]  ;;  %p541_p13 = por %p540_p12, %p539_p11 }
  0x3c   :  { %431 = vmatprep.subr.bf16.mxu1 %v430_v15  ;;  %v78_v22 = vld [vmem:[#allocation6 + $0x48] sm:$0xff]  ;;  %v438_v23 = vpack.c.bf16 %v176_v19, %v175_v18  ;;  %v178_v25 = vld [vmem:[#allocation8 + $0x38] sm:$0xff]  ;;  %v79_v27 = vld [vmem:[#allocation6 + $0x50] sm:$0xff] }
  0x3d   :  { %433 = vmatpush3.bf16.msra.mxu1 %v430_v15  ;;  %v414_v26 = vpack.c.bf16 %v78_v22, %v77_v21  ;;  %v80_v28 = vld [vmem:[#allocation6 + $0x58] sm:$0xff]  ;;  %v442_v29 = vpack.c.bf16 %v178_v25, %v177_v24  ;;  %v179_v30 = vld [vmem:[#allocation8 + $0x40] sm:$0xff]  ;;  %v180_v31 = vld [vmem:[#allocation8 + $0x48] sm:$0xff]  ;;  %p542_p0 = pnand %p541_p13, %p535_p10 }
  0x3e   :  { %405 = vmatpush3.bf16.msra.mxu0 %v402_v5  ;;  %435 = vmatprep.subr.bf16.mxu1 %v434_v17  ;;  %v418_v32 = vpack.c.bf16 %v80_v28, %v79_v27  ;;  %v81_v33 = vld [vmem:[#allocation6 + $0x60] sm:$0xff]  ;;  %v82_v34 = vld [vmem:[#allocation6 + $0x68] sm:$0xff]  ;;  %v446_v35 = vpack.c.bf16 %v180_v31, %v179_v30  ;;  %v181_v36 = vld [vmem:[#allocation8 + $0x50] sm:$0xff] }
  0x3f   :  { %407 = vmatprep.subr.bf16.mxu0 %v406_v8  ;;  %v182_v37 = vld [vmem:[#allocation8 + $0x58] sm:$0xff]  ;;  %v422_v38 = vpack.c.bf16 %v82_v34, %v81_v33  ;;  %v83_v39 = vld [vmem:[#allocation6 + $0x70] sm:$0xff]  ;;  %v183_v42 = vld [vmem:[#allocation8 + $0x60] sm:$0xff] }
  0x40   :  { %v84_v40 = vld [vmem:[#allocation6 + $0x78] sm:$0xff]  ;;  %v450_v41 = vpack.c.bf16 %v182_v37, %v181_v36  ;;  %v184_v43 = vld [vmem:[#allocation8 + $0x68] sm:$0xff]  ;;  %v185_v46 = vld [vmem:[#allocation8 + $0x70] sm:$0xff] }
  0x41   :  { %437 = vmatpush3.bf16.msra.mxu1 %v434_v17  ;;  %v426_v44 = vpack.c.bf16 %v84_v40, %v83_v39  ;;  %v454_v45 = vpack.c.bf16 %v184_v43, %v183_v42  ;;  %v186_v47 = vld [vmem:[#allocation8 + $0x78] sm:$0xff]  ;;  %v291_v52 = vld [vmem:[%s666_s3] ss:$0 sm:$0xff] }
  0x42   :  { %409 = vmatpush3.bf16.msra.mxu0 %v406_v8  ;;  %439 = vmatprep.subr.bf16.mxu1 %v438_v23  ;;  %v458_v48 = vpack.c.bf16 %v186_v47, %v185_v46  ;;  %v66_v49 = vld [vmem:[#allocation3 + $0x8] sm:$0xff] }
  0x43   :  { %411 = vmatprep.subr.bf16.mxu0 %v410_v20 }
  0x45   :  { %441 = vmatpush3.bf16.msra.mxu1 %v438_v23 }
  0x46   :  { %413 = vmatpush3.bf16.msra.mxu0 %v410_v20  ;;  %443 = vmatprep.subr.bf16.mxu1 %v442_v29 }
  0x47   :  { %415 = vmatprep.subr.bf16.mxu0 %v414_v26 }
  0x49   :  { %445 = vmatpush3.bf16.msra.mxu1 %v442_v29 }
  0x4a   :  { %417 = vmatpush3.bf16.msra.mxu0 %v414_v26  ;;  %447 = vmatprep.subr.bf16.mxu1 %v446_v35 }
  0x4b   :  { %419 = vmatprep.subr.bf16.mxu0 %v418_v32 }
  0x4d   :  { %449 = vmatpush3.bf16.msra.mxu1 %v446_v35 }
  0x4e   :  { %421 = vmatpush3.bf16.msra.mxu0 %v418_v32  ;;  %451 = vmatprep.subr.bf16.mxu1 %v450_v41 }
  0x4f   :  { %423 = vmatprep.subr.bf16.mxu0 %v422_v38 }
  0x51   :  { %453 = vmatpush3.bf16.msra.mxu1 %v450_v41 }
  0x52   :  { %425 = vmatpush3.bf16.msra.mxu0 %v422_v38  ;;  %455 = vmatprep.subr.bf16.mxu1 %v454_v45 }
  0x53   :  { %427 = vmatprep.subr.bf16.mxu0 %v426_v44 }
  0x55   :  { %457 = vmatpush3.bf16.msra.mxu1 %v454_v45 }
  0x56   :  { %429 = vmatpush3.bf16.msra.mxu0 %v426_v44  ;;  %459 = vmatprep.subr.bf16.mxu1 %v458_v48 }
  0x59   :  { %361 = vmatmul.mubr.f32.vlgmr.msra.gmra.mrb[0].mxu0 %v66_v49  ;;  %461 = vmatpush3.bf16.msra.mxu1 %v458_v48 }
 0x12c   :  { %v362_v50 = vpop.f32.mrb[0].mxu0 }
 0x12d   :  { %v153_v51 = vpop.f32.mrb[1].mxu0 }
 0x12e   :  { %395 = vmatprep.mubr.f32.mxu1 %v153_v51 }
 0x12f   :  { %396 = vmatmul.mubr.f32.vlgmr.msra.gmra.mrb[0].mxu1 %v362_v50 }
 0x202   :  { %v397_v53 = vpop.f32.mrb[0].mxu1 }
 0x203   :  { %v266_v54 = vadd.f32 %v397_v53, %v291_v52  ;;  %v260_v55 = vpop.f32.mrb[1].mxu1 }
 0x204   :  { %v261_v56 = vadd.f32 %v291_v52, %v260_v55 }
 0x205   :  { %v270_v57 = vmax.f32 %v266_v54, 0.0 }
 0x206   :  { %v269_v58 = vmax.f32 %v261_v56, 0.0 }
 0x207   :  { %272 = vst [vmem:[#allocation9 + $0x8] sm:$0xff] %v270_v57 }
 0x208   :  { %271 = vst [vmem:[#allocation9] sm:$0xff] %v269_v58 }
 0x209   :  { %545 = shalt.err (!%p542_p0)
}
 0x20a   :  { %s546_s6 = scalar_lea.hbm %s667_s4, 256 }
 0x20b   :  { %p547_p1 = scmp.ne.s32.totalorder %s667_s4, %s546_s6  ;;  %p550_p2 = scmp.lt.u32.totalorder %s546_s6, %s667_s4 }
 0x20d   :  { %p552_p3 = pnand %p550_p2, %p547_p1 }
 0x20f   :  { %555 = shalt.err (!%p552_p3)
}
 0x210   :  { %284 = dma.vmem_to_hbm [thread:$0]  %s279_s29, 256, %s667_s4, [#allocation5], %s564_s27, %s564_s27, %s565_s28  }
 0x211   :  { %560 = dma.done.wait [#allocation5], 256  }
 0x212   :  { %561 = vsyncadd [#allocation5], 4294967040 }
 0x213   :  { %288 = vsyncpa [#allocation4], 1 }
 0x214   :  { %289 = vsyncpa [#allocation7], 1 }
 0x215   :  { %290 = vsyncpa [#allocation5], 1 }

</bundles_post_ra>
